<compile_context>
chip_gen: v6e
topology: v6e:2x2x1
jax: 0.10.0
libtpu: 0.0.40
codegen_flags: <defaults>
</compile_context>

<pallas_src>
import jax
import jax.numpy as jnp
from jax import lax
from jax.experimental import pallas as pl
from jax.experimental.pallas import tpu as pltpu


def _make_mha_kernel(num_heads: int, dim_k: int, dim_v: int):
    """Returns a kernel closed over the (static) head geometry."""

    def mha_kernel(q_ref, k_ref, v_ref,
                   wq_ref, bq_ref, wk_ref, bk_ref, wv_ref, bv_ref,
                   wo_ref, bo_ref, o_ref):
        q = q_ref[0]            # (TQ, Din)
        k = k_ref[0]            # (Sk, Din)
        v = v_ref[0]            # (Sk, Din)

        # Fused (all-heads) projections.  wq/bq are pre-scaled by 1/sqrt(Dk)
        # in the wrapper, so no O(TQ*Sk) score scaling is needed below.
        Q = jnp.dot(q, wq_ref[...], preferred_element_type=jnp.float32) + bq_ref[...]  # (TQ, H*Dk)
        K = jnp.dot(k, wk_ref[...], preferred_element_type=jnp.float32) + bk_ref[...]  # (Sk, H*Dk)
        V = jnp.dot(v, wv_ref[...], preferred_element_type=jnp.float32) + bv_ref[...]  # (Sk, H*Dv)

        # Per-head attention (unrolled at trace time; H is a Python int).
        head_outs = []
        for h in range(num_heads):
            Qh = Q[:, h * dim_k:(h + 1) * dim_k]        # (TQ, Dk), already scaled
            Kh = K[:, h * dim_k:(h + 1) * dim_k]        # (Sk, Dk)
            Vh = V[:, h * dim_v:(h + 1) * dim_v]        # (Sk, Dv)

            # scores = Qh @ Kh^T without materializing the transpose.
            s = lax.dot_general(Qh, Kh, (((1,), (1,)), ((), ())),
                                preferred_element_type=jnp.float32)   # (TQ, Sk)

            # numerically-stabilized softmax in f32
            s = s - jnp.max(s, axis=-1, keepdims=True)
            p = jnp.exp(s)
            p = p * pl.reciprocal(jnp.sum(p, axis=-1, keepdims=True), approx=False)

            head_outs.append(
                jnp.dot(p, Vh, preferred_element_type=jnp.float32))   # (TQ, Dv)

        # Single lane-dense output projection over the concatenated heads.
        cat = jnp.concatenate(head_outs, axis=-1)                     # (TQ, H*Dv)
        o_ref[0] = (jnp.dot(cat, wo_ref[...], preferred_element_type=jnp.float32)
                    + bo_ref[...])

    return mha_kernel


def _pick_q_tile(sq: int, cap: int = 256) -> int:
    """Largest divisor of sq that is <= cap and a multiple of 8 (or sq itself)."""
    if sq <= cap:
        return sq
    for t in range(cap, 7, -8):
        if sq % t == 0:
            return t
    return sq


def multi_head_attention(query, key, value, params):
    """query/key/value: (B, S, dim_in) float32.  Returns (B, Sq, dim_in)."""
    wq, bq, wk, bk, wv, bv, wo, bo = params
    B, Sq, Din = query.shape
    _, Sk, _ = key.shape
    H, _, Dk = wq.shape
    Dv = wv.shape[-1]

    # ---- wrapper-side layout plumbing: fuse heads into lane-dense weights ----
    scale = jnp.float32(1.0 / (float(Dk) ** 0.5))
    # (H, Din, D) -> (Din, H*D)  (per-head slices live on contiguous lanes)
    wq_f = (wq.transpose(1, 0, 2).reshape(Din, H * Dk) * scale).astype(jnp.float32)
    bq_f = (bq.transpose(1, 0, 2).reshape(1, H * Dk) * scale).astype(jnp.float32)
    wk_f = wk.transpose(1, 0, 2).reshape(Din, H * Dk).astype(jnp.float32)
    bk_f = bk.transpose(1, 0, 2).reshape(1, H * Dk).astype(jnp.float32)
    wv_f = wv.transpose(1, 0, 2).reshape(Din, H * Dv).astype(jnp.float32)
    bv_f = bv.transpose(1, 0, 2).reshape(1, H * Dv).astype(jnp.float32)
    wo_f = wo.reshape(H * Dv, Din).astype(jnp.float32)                # Wo on concat(heads)
    bo_f = bo.reshape(1, Din).astype(jnp.float32)

    TQ = _pick_q_tile(Sq)
    grid = (B, Sq // TQ)

    def qblk(shape):      # per-(batch, q-tile) block
        return pl.BlockSpec(shape, lambda b, i: (b, i, 0))

    def kvblk(shape):     # per-batch block, replicated over the q-tile axis
        return pl.BlockSpec(shape, lambda b, i: (b, 0, 0))

    def wblk(shape):      # weights / biases: replicated everywhere
        return pl.BlockSpec(shape, lambda b, i: (0, 0))

    kernel = _make_mha_kernel(H, Dk, Dv)

    out = pl.pallas_call(
        kernel,
        out_shape=jax.ShapeDtypeStruct((B, Sq, Din), jnp.float32),
        grid_spec=pltpu.PrefetchScalarGridSpec(
            num_scalar_prefetch=0,
            grid=grid,
            in_specs=[
                qblk((1, TQ, Din)),          # q
                kvblk((1, Sk, Din)),         # k
                kvblk((1, Sk, Din)),         # v
                wblk((Din, H * Dk)),         # wq (pre-scaled)
                wblk((1, H * Dk)),           # bq (pre-scaled)
                wblk((Din, H * Dk)),         # wk
                wblk((1, H * Dk)),           # bk
                wblk((Din, H * Dv)),         # wv
                wblk((1, H * Dv)),           # bv
                wblk((H * Dv, Din)),         # wo
                wblk((1, Din)),              # bo
            ],
            out_specs=pl.BlockSpec((1, TQ, Din), lambda b, i: (b, i, 0)),
        ),
        compiler_params=pltpu.CompilerParams(
            dimension_semantics=("parallel", "parallel")),
    )(query, key, value, wq_f, bq_f, wk_f, bk_f, wv_f, bv_f, wo_f, bo_f)
    return out


def reference_mha(query, key, value, params):
    """Pure-JAX mirror of the PyTorch module (per-head, f32)."""
    wq, bq, wk, bk, wv, bv, wo, bo = params
    H = wq.shape[0]
    heads = []
    for h in range(H):
        Q = query @ wq[h] + bq[h]
        K = key @ wk[h] + bk[h]
        V = value @ wv[h] + bv[h]
        scores = jnp.einsum("bqd,bkd->bqk", Q, K) / jnp.sqrt(jnp.float32(Q.shape[-1]))
        p = jax.nn.softmax(scores, axis=-1)
        heads.append(jnp.einsum("bqk,bkd->bqd", p, V))
    cat = jnp.concatenate(heads, axis=-1)
    wo_full = wo.reshape(-1, wo.shape[-1])  # (H*Dv, Din)
    return cat @ wo_full + bo


if __name__ == "__main__":
    # Small deterministic config.
    B, S, Din, Dk, Dv, H = 2, 8, 32, 16, 16, 2

    key0 = jax.random.PRNGKey(0)
    ks = jax.random.split(key0, 12)

    query = jax.random.normal(ks[0], (B, S, Din), dtype=jnp.float32)
    key_t = jax.random.normal(ks[1], (B, S, Din), dtype=jnp.float32)
    value = jax.random.normal(ks[2], (B, S, Din), dtype=jnp.float32)

    # Deterministic synthetic parameters (PyTorch Linear weights stored
    # pre-transposed: y = x @ W + b).
    wq = jax.random.normal(ks[3], (H, Din, Dk), dtype=jnp.float32) * 0.1
    bq = jax.random.normal(ks[4], (H, 1, Dk), dtype=jnp.float32) * 0.1
    wk = jax.random.normal(ks[5], (H, Din, Dk), dtype=jnp.float32) * 0.1
    bk = jax.random.normal(ks[6], (H, 1, Dk), dtype=jnp.float32) * 0.1
    wv = jax.random.normal(ks[7], (H, Din, Dv), dtype=jnp.float32) * 0.1
    bv = jax.random.normal(ks[8], (H, 1, Dv), dtype=jnp.float32) * 0.1
    wo = jax.random.normal(ks[9], (H, Dv, Din), dtype=jnp.float32) * 0.1
    bo = jax.random.normal(ks[10], (1, Din), dtype=jnp.float32) * 0.1

    params = (wq, bq, wk, bk, wv, bv, wo, bo)

    out = multi_head_attention(query, key_t, value, params)
    out = jax.block_until_ready(out)

    ref = reference_mha(query, key_t, value, params)
    assert out.shape == (B, S, Din)
    assert jnp.allclose(out, ref, atol=1e-4, rtol=1e-4), "mismatch vs reference"

    print("KERNEL_OK")
</pallas_src>

<mosaic_0001>
module attributes {stable_mosaic.version = 11 : i64} {
  func.func @mha_kernel(%arg0: i32, %arg1: i32, %arg2: memref<1x8x32xf32, #tpu.memory_space<vmem>>, %arg3: memref<1x8x32xf32, #tpu.memory_space<vmem>>, %arg4: memref<1x8x32xf32, #tpu.memory_space<vmem>>, %arg5: memref<32x32xf32, #tpu.memory_space<vmem>>, %arg6: memref<1x32xf32, #tpu.memory_space<vmem>>, %arg7: memref<32x32xf32, #tpu.memory_space<vmem>>, %arg8: memref<1x32xf32, #tpu.memory_space<vmem>>, %arg9: memref<32x32xf32, #tpu.memory_space<vmem>>, %arg10: memref<1x32xf32, #tpu.memory_space<vmem>>, %arg11: memref<32x32xf32, #tpu.memory_space<vmem>>, %arg12: memref<1x32xf32, #tpu.memory_space<vmem>>, %arg13: memref<1x8x32xf32, #tpu.memory_space<vmem>>) attributes {dimension_semantics = [#tpu.dimension_semantics<parallel>, #tpu.dimension_semantics<parallel>], iteration_bounds = array<i64: 2, 1>, scalar_prefetch = 0 : i64, scratch_operands = 0 : i64, tpu.core_type = #tpu.core_type<tc>, window_params = [{transform_indices = @transform_0, window_bounds = array<i64: 1, 8, 32>}, {transform_indices = @transform_1, window_bounds = array<i64: 1, 8, 32>}, {transform_indices = @transform_2, window_bounds = array<i64: 1, 8, 32>}, {pipeline_mode = #tpu.pipeline_mode<synchronous>, transform_indices = @transform_3, window_bounds = array<i64: 32, 32>}, {pipeline_mode = #tpu.pipeline_mode<synchronous>, transform_indices = @transform_4, window_bounds = array<i64: 1, 32>}, {pipeline_mode = #tpu.pipeline_mode<synchronous>, transform_indices = @transform_5, window_bounds = array<i64: 32, 32>}, {pipeline_mode = #tpu.pipeline_mode<synchronous>, transform_indices = @transform_6, window_bounds = array<i64: 1, 32>}, {pipeline_mode = #tpu.pipeline_mode<synchronous>, transform_indices = @transform_7, window_bounds = array<i64: 32, 32>}, {pipeline_mode = #tpu.pipeline_mode<synchronous>, transform_indices = @transform_8, window_bounds = array<i64: 1, 32>}, {pipeline_mode = #tpu.pipeline_mode<synchronous>, transform_indices = @transform_9, window_bounds = array<i64: 32, 32>}, {pipeline_mode = #tpu.pipeline_mode<synchronous>, transform_indices = @transform_10, window_bounds = array<i64: 1, 32>}, {transform_indices = @transform_11, window_bounds = array<i64: 1, 8, 32>}]} {
    %c0 = arith.constant 0 : index
    %c0_0 = arith.constant 0 : index
    %c0_1 = arith.constant 0 : index
    %0 = vector.load %arg2[%c0, %c0_0, %c0_1] : memref<1x8x32xf32, #tpu.memory_space<vmem>>, vector<1x8x32xf32>
    %1 = vector.shape_cast %0 : vector<1x8x32xf32> to vector<8x32xf32>
    %c0_2 = arith.constant 0 : index
    %c0_3 = arith.constant 0 : index
    %c0_4 = arith.constant 0 : index
    %2 = vector.load %arg3[%c0_2, %c0_3, %c0_4] : memref<1x8x32xf32, #tpu.memory_space<vmem>>, vector<1x8x32xf32>
    %3 = vector.shape_cast %2 : vector<1x8x32xf32> to vector<8x32xf32>
    %c0_5 = arith.constant 0 : index
    %c0_6 = arith.constant 0 : index
    %c0_7 = arith.constant 0 : index
    %4 = vector.load %arg4[%c0_5, %c0_6, %c0_7] : memref<1x8x32xf32, #tpu.memory_space<vmem>>, vector<1x8x32xf32>
    %5 = vector.shape_cast %4 : vector<1x8x32xf32> to vector<8x32xf32>
    %c0_8 = arith.constant 0 : index
    %c0_9 = arith.constant 0 : index
    %6 = vector.load %arg5[%c0_8, %c0_9] : memref<32x32xf32, #tpu.memory_space<vmem>>, vector<32x32xf32>
    %cst = arith.constant dense<0.000000e+00> : vector<8x32xf32>
    %7 = tpu.matmul %1, %6, %cst {dimension_numbers = #tpu.dot_dimension_numbers<[1], [0], [0], [1], [0, 0, 1, 1], [], []>} : vector<8x32xf32>, vector<32x32xf32>, vector<8x32xf32> -> vector<8x32xf32>
    %c0_10 = arith.constant 0 : index
    %c0_11 = arith.constant 0 : index
    %8 = vector.load %arg6[%c0_10, %c0_11] : memref<1x32xf32, #tpu.memory_space<vmem>>, vector<1x32xf32>
    %9 = vector.broadcast %8 : vector<1x32xf32> to vector<8x32xf32>
    %10 = arith.addf %7, %9 : vector<8x32xf32>
    %c0_12 = arith.constant 0 : index
    %c0_13 = arith.constant 0 : index
    %11 = vector.load %arg7[%c0_12, %c0_13] : memref<32x32xf32, #tpu.memory_space<vmem>>, vector<32x32xf32>
    %cst_14 = arith.constant dense<0.000000e+00> : vector<8x32xf32>
    %12 = tpu.matmul %3, %11, %cst_14 {dimension_numbers = #tpu.dot_dimension_numbers<[1], [0], [0], [1], [0, 0, 1, 1], [], []>} : vector<8x32xf32>, vector<32x32xf32>, vector<8x32xf32> -> vector<8x32xf32>
    %c0_15 = arith.constant 0 : index
    %c0_16 = arith.constant 0 : index
    %13 = vector.load %arg8[%c0_15, %c0_16] : memref<1x32xf32, #tpu.memory_space<vmem>>, vector<1x32xf32>
    %14 = vector.broadcast %13 : vector<1x32xf32> to vector<8x32xf32>
    %15 = arith.addf %12, %14 : vector<8x32xf32>
    %c0_17 = arith.constant 0 : index
    %c0_18 = arith.constant 0 : index
    %16 = vector.load %arg9[%c0_17, %c0_18] : memref<32x32xf32, #tpu.memory_space<vmem>>, vector<32x32xf32>
    %cst_19 = arith.constant dense<0.000000e+00> : vector<8x32xf32>
    %17 = tpu.matmul %5, %16, %cst_19 {dimension_numbers = #tpu.dot_dimension_numbers<[1], [0], [0], [1], [0, 0, 1, 1], [], []>} : vector<8x32xf32>, vector<32x32xf32>, vector<8x32xf32> -> vector<8x32xf32>
    %c0_20 = arith.constant 0 : index
    %c0_21 = arith.constant 0 : index
    %18 = vector.load %arg10[%c0_20, %c0_21] : memref<1x32xf32, #tpu.memory_space<vmem>>, vector<1x32xf32>
    %19 = vector.broadcast %18 : vector<1x32xf32> to vector<8x32xf32>
    %20 = arith.addf %17, %19 : vector<8x32xf32>
    %21 = vector.extract_strided_slice %10 {offsets = [0, 0], sizes = [8, 16], strides = [1, 1]} : vector<8x32xf32> to vector<8x16xf32>
    %22 = vector.extract_strided_slice %15 {offsets = [0, 0], sizes = [8, 16], strides = [1, 1]} : vector<8x32xf32> to vector<8x16xf32>
    %23 = vector.extract_strided_slice %20 {offsets = [0, 0], sizes = [8, 16], strides = [1, 1]} : vector<8x32xf32> to vector<8x16xf32>
    %cst_22 = arith.constant dense<0.000000e+00> : vector<8x8xf32>
    %24 = tpu.matmul %21, %22, %cst_22 {dimension_numbers = #tpu.dot_dimension_numbers<[1], [1], [0], [0], [0, 0, 1, 0], [], []>} : vector<8x16xf32>, vector<8x16xf32>, vector<8x8xf32> -> vector<8x8xf32>
    %cst_23 = arith.constant dense<0xFF800000> : vector<8xf32>
    %25 = vector.multi_reduction <maximumf>, %24, %cst_23 [1] : vector<8x8xf32> to vector<8xf32>
    %26 = vector.shape_cast %25 : vector<8xf32> to vector<8x1xf32>
    %27 = vector.broadcast %26 : vector<8x1xf32> to vector<8x8xf32>
    %28 = arith.subf %24, %27 : vector<8x8xf32>
    %29 = math.exp %28 : vector<8x8xf32>
    %cst_24 = arith.constant dense<0.000000e+00> : vector<8xf32>
    %30 = vector.multi_reduction <add>, %29, %cst_24 [1] : vector<8x8xf32> to vector<8xf32>
    %31 = vector.shape_cast %30 : vector<8xf32> to vector<8x1xf32>
    %32 = tpu.reciprocal %31 : vector<8x1xf32> -> vector<8x1xf32>
    %33 = vector.broadcast %32 : vector<8x1xf32> to vector<8x8xf32>
    %34 = arith.mulf %29, %33 : vector<8x8xf32>
    %cst_25 = arith.constant dense<0.000000e+00> : vector<8x16xf32>
    %35 = tpu.matmul %34, %23, %cst_25 {dimension_numbers = #tpu.dot_dimension_numbers<[1], [0], [0], [1], [0, 0, 1, 1], [], []>} : vector<8x8xf32>, vector<8x16xf32>, vector<8x16xf32> -> vector<8x16xf32>
    %36 = vector.extract_strided_slice %10 {offsets = [0, 16], sizes = [8, 16], strides = [1, 1]} : vector<8x32xf32> to vector<8x16xf32>
    %37 = vector.extract_strided_slice %15 {offsets = [0, 16], sizes = [8, 16], strides = [1, 1]} : vector<8x32xf32> to vector<8x16xf32>
    %38 = vector.extract_strided_slice %20 {offsets = [0, 16], sizes = [8, 16], strides = [1, 1]} : vector<8x32xf32> to vector<8x16xf32>
    %cst_26 = arith.constant dense<0.000000e+00> : vector<8x8xf32>
    %39 = tpu.matmul %36, %37, %cst_26 {dimension_numbers = #tpu.dot_dimension_numbers<[1], [1], [0], [0], [0, 0, 1, 0], [], []>} : vector<8x16xf32>, vector<8x16xf32>, vector<8x8xf32> -> vector<8x8xf32>
    %cst_27 = arith.constant dense<0xFF800000> : vector<8xf32>
    %40 = vector.multi_reduction <maximumf>, %39, %cst_27 [1] : vector<8x8xf32> to vector<8xf32>
    %41 = vector.shape_cast %40 : vector<8xf32> to vector<8x1xf32>
    %42 = vector.broadcast %41 : vector<8x1xf32> to vector<8x8xf32>
    %43 = arith.subf %39, %42 : vector<8x8xf32>
    %44 = math.exp %43 : vector<8x8xf32>
    %cst_28 = arith.constant dense<0.000000e+00> : vector<8xf32>
    %45 = vector.multi_reduction <add>, %44, %cst_28 [1] : vector<8x8xf32> to vector<8xf32>
    %46 = vector.shape_cast %45 : vector<8xf32> to vector<8x1xf32>
    %47 = tpu.reciprocal %46 : vector<8x1xf32> -> vector<8x1xf32>
    %48 = vector.broadcast %47 : vector<8x1xf32> to vector<8x8xf32>
    %49 = arith.mulf %44, %48 : vector<8x8xf32>
    %cst_29 = arith.constant dense<0.000000e+00> : vector<8x16xf32>
    %50 = tpu.matmul %49, %38, %cst_29 {dimension_numbers = #tpu.dot_dimension_numbers<[1], [0], [0], [1], [0, 0, 1, 1], [], []>} : vector<8x8xf32>, vector<8x16xf32>, vector<8x16xf32> -> vector<8x16xf32>
    %51 = tpu.concatenate %35, %50 in 1 : vector<8x16xf32>, vector<8x16xf32> -> vector<8x32xf32>
    %c0_30 = arith.constant 0 : index
    %c0_31 = arith.constant 0 : index
    %52 = vector.load %arg11[%c0_30, %c0_31] : memref<32x32xf32, #tpu.memory_space<vmem>>, vector<32x32xf32>
    %cst_32 = arith.constant dense<0.000000e+00> : vector<8x32xf32>
    %53 = tpu.matmul %51, %52, %cst_32 {dimension_numbers = #tpu.dot_dimension_numbers<[1], [0], [0], [1], [0, 0, 1, 1], [], []>} : vector<8x32xf32>, vector<32x32xf32>, vector<8x32xf32> -> vector<8x32xf32>
    %c0_33 = arith.constant 0 : index
    %c0_34 = arith.constant 0 : index
    %54 = vector.load %arg12[%c0_33, %c0_34] : memref<1x32xf32, #tpu.memory_space<vmem>>, vector<1x32xf32>
    %55 = vector.broadcast %54 : vector<1x32xf32> to vector<8x32xf32>
    %56 = arith.addf %53, %55 : vector<8x32xf32>
    %c0_35 = arith.constant 0 : index
    %c0_36 = arith.constant 0 : index
    %c0_37 = arith.constant 0 : index
    %57 = vector.load %arg13[%c0_35, %c0_36, %c0_37] : memref<1x8x32xf32, #tpu.memory_space<vmem>>, vector<1x8x32xf32>
    %58 = vector.shape_cast %57 : vector<1x8x32xf32> to vector<8x32xf32>
    %59 = vector.shape_cast %56 : vector<8x32xf32> to vector<1x8x32xf32>
    tpu.vector_store %arg13[%c0_35, %c0_36, %c0_37], %59 {strides = array<i32>} : memref<1x8x32xf32, #tpu.memory_space<vmem>>, vector<1x8x32xf32>,
    return
  }
  func.func @transform_0(%arg0: i32, %arg1: i32) -> (i32, i32, i32) {
    %c0_i32 = arith.constant 0 : i32
    %c0_i32_0 = arith.constant 0 : i32
    return %arg0, %arg1, %c0_i32 : i32, i32, i32
  }
  func.func @transform_1(%arg0: i32, %arg1: i32) -> (i32, i32, i32) {
    %c0_i32 = arith.constant 0 : i32
    %c0_i32_0 = arith.constant 0 : i32
    %c0_i32_1 = arith.constant 0 : i32
    return %arg0, %c0_i32, %c0_i32_0 : i32, i32, i32
  }
  func.func @transform_2(%arg0: i32, %arg1: i32) -> (i32, i32, i32) {
    %c0_i32 = arith.constant 0 : i32
    %c0_i32_0 = arith.constant 0 : i32
    %c0_i32_1 = arith.constant 0 : i32
    return %arg0, %c0_i32, %c0_i32_0 : i32, i32, i32
  }
  func.func @transform_3(%arg0: i32, %arg1: i32) -> (i32, i32) {
    %c0_i32 = arith.constant 0 : i32
    %c0_i32_0 = arith.constant 0 : i32
    %c0_i32_1 = arith.constant 0 : i32
    return %c0_i32, %c0_i32_0 : i32, i32
  }
  func.func @transform_4(%arg0: i32, %arg1: i32) -> (i32, i32) {
    %c0_i32 = arith.constant 0 : i32
    %c0_i32_0 = arith.constant 0 : i32
    %c0_i32_1 = arith.constant 0 : i32
    return %c0_i32, %c0_i32_0 : i32, i32
  }
  func.func @transform_5(%arg0: i32, %arg1: i32) -> (i32, i32) {
    %c0_i32 = arith.constant 0 : i32
    %c0_i32_0 = arith.constant 0 : i32
    %c0_i32_1 = arith.constant 0 : i32
    return %c0_i32, %c0_i32_0 : i32, i32
  }
  func.func @transform_6(%arg0: i32, %arg1: i32) -> (i32, i32) {
    %c0_i32 = arith.constant 0 : i32
    %c0_i32_0 = arith.constant 0 : i32
    %c0_i32_1 = arith.constant 0 : i32
    return %c0_i32, %c0_i32_0 : i32, i32
  }
  func.func @transform_7(%arg0: i32, %arg1: i32) -> (i32, i32) {
    %c0_i32 = arith.constant 0 : i32
    %c0_i32_0 = arith.constant 0 : i32
    %c0_i32_1 = arith.constant 0 : i32
    return %c0_i32, %c0_i32_0 : i32, i32
  }
  func.func @transform_8(%arg0: i32, %arg1: i32) -> (i32, i32) {
    %c0_i32 = arith.constant 0 : i32
    %c0_i32_0 = arith.constant 0 : i32
    %c0_i32_1 = arith.constant 0 : i32
    return %c0_i32, %c0_i32_0 : i32, i32
  }
  func.func @transform_9(%arg0: i32, %arg1: i32) -> (i32, i32) {
    %c0_i32 = arith.constant 0 : i32
    %c0_i32_0 = arith.constant 0 : i32
    %c0_i32_1 = arith.constant 0 : i32
    return %c0_i32, %c0_i32_0 : i32, i32
  }
  func.func @transform_10(%arg0: i32, %arg1: i32) -> (i32, i32) {
    %c0_i32 = arith.constant 0 : i32
    %c0_i32_0 = arith.constant 0 : i32
    %c0_i32_1 = arith.constant 0 : i32
    return %c0_i32, %c0_i32_0 : i32, i32
  }
  func.func @transform_11(%arg0: i32, %arg1: i32) -> (i32, i32, i32) {
    %c0_i32 = arith.constant 0 : i32
    %c0_i32_0 = arith.constant 0 : i32
    return %arg0, %arg1, %c0_i32 : i32, i32, i32
  }
}

</mosaic_0001>

<bundles_post_ra>
// kernel: tpu_custom_call.1
= control target key start
LH: loop header
LB: loop body
LE: loop exit
PB: predicated region body
PF: predicated region fallthrough
CT: control target
= control target key end

     0   :  { %s2351_s0 = inlined_call_operand.hbm [shape: f32[2,8,32], index: 0, kind: input, shape index: {}]   ;;  %s2352_s1 = inlined_call_operand.hbm [shape: f32[2,8,32], index: 1, kind: input, shape index: {}]   ;;  %s2353_s2 = inlined_call_operand.hbm [shape: f32[2,8,32], index: 2, kind: input, shape index: {}]   ;;  %s2354_s3 = inlined_call_operand.hbm [shape: f32[32,32], index: 3, kind: input, shape index: {}]   ;;  %s2355_s4 = inlined_call_operand.vmem [shape: f32[1,32], index: 4, kind: input, shape index: {}]   ;;  %s2356_s5 = inlined_call_operand.hbm [shape: f32[32,32], index: 5, kind: input, shape index: {}]   ;;  %s2357_s6 = inlined_call_operand.vmem [shape: f32[1,32], index: 6, kind: input, shape index: {}]   ;;  %s2358_s7 = inlined_call_operand.hbm [shape: f32[32,32], index: 7, kind: input, shape index: {}]   ;;  %s2359_s8 = inlined_call_operand.vmem [shape: f32[1,32], index: 8, kind: input, shape index: {}]   ;;  %s2360_s9 = inlined_call_operand.hbm [shape: f32[32,32], index: 9, kind: input, shape index: {}]   ;;  %s2361_s10 = inlined_call_operand.vmem [shape: f32[1,32], index: 10, kind: input, shape index: {}]   ;;  %s2362_s11 = inlined_call_operand.hbm [shape: f32[2,8,32], index: 11, kind: output, shape index: {}]  }
   0x1   :  { %2381 = sst [smem:[#allocation27_spill]] %s2352_s1 }
   0x2   :  { %2382 = sst [smem:[#allocation28_spill]] %s2354_s3 }
   0x3   :  { %2383 = sst [smem:[#allocation29_spill]] %s2356_s5 }
   0x4   :  { %2384 = sst [smem:[#allocation30_spill]] %s2358_s7 }
   0x5   :  { %2385 = sst [smem:[#allocation31_spill]] %s2361_s10 }
   0x6   :  { %2386 = sst [smem:[#allocation32_spill]] %s2362_s11 }
   0x7   :  { %16 = vsyncpa [#allocation3], 0 }
   0x8   :  { %18 = vsyncpa [#allocation3 + $0x1], 0 }
   0x9   :  { %19 = vsyncpa [#allocation6], 0 }
   0xa   :  { %21 = vsyncpa [#allocation6 + $0x1], 0 }
   0xb   :  { %22 = vsyncpa [#allocation9], 0 }
   0xc   :  { %23 = vsyncpa [#allocation12], 0 }
   0xd   :  { %24 = vsyncpa [#allocation4], 0 }
   0xe   :  { %26 = vsyncpa [#allocation4 + $0x1], 0  ;;  %s2014_s17 = smov 0   ;;  %s2016_s18 = smov 0  }
   0xf   :  { %s2018_s19 = smov 0   ;;  %s2020_s20 = smov 0  }
  0x10   :  { %s2022_s21 = smov 0   ;;  %s2024_s22 = smov 0  }
  0x11 LB: > { %2387 = sst [smem:[#allocation20_spill]] %s1918_s17  ;;  %s2045_s23 = sadd.s32 4294967295, %s1938_s22   ;;  %s1938_s22 = sphi %s2024_s22, %s32_s22   ;;  %s1934_s21 = sphi %s2022_s21, %s2427_s21   ;;  %s1930_s20 = sphi %s2020_s20, %s2426_s20   ;;  %s1926_s19 = sphi %s2018_s19, %s2430_s19   ;;  %s1922_s18 = sphi %s2016_s18, %s2429_s18   ;;  %s1918_s17 = sphi %s2014_s17, %s2428_s17  }
  0x12   : > { %2388 = sst [smem:[#allocation21_spill]] %s1934_s21  ;;  %p1400_p0 = scmp.ge.s32.totalorder %s1938_s22, 1 }
  0x13   : > { %2389 = sst [smem:[#allocation22_spill]] %s1938_s22  ;;  %p2375_p1 = scmp.eq.s32.totalorder %s2045_s23, 0 }
  0x14   : > { %p325_p2 = scmp.lt.s32.totalorder %s1938_s22, 3  ;;  %s1940_s25 = smov [#allocation8]  }
  0x15   : > { %s337_s26 = sshll.u32 %s1940_s25, 4  ;;  %s1941_s28 = smov [#allocation11]   ;;  %s338_s26 = int_to_ptr.vmem [resolvable:$true] %s337_s26 }
  0x16   : > { %p2050_p3 = pnand %p1400_p0, %p325_p2  ;;  %s369_s29 = sshll.u32 %s1941_s28, 4  ;;  %s370_s29 = int_to_ptr.vmem [resolvable:$true] %s369_s29 }
  0x17   : > { %s1669_s30 = scalar_lea.vmem %s338_s26, 512  ;;  %p1677_p11 = scmp.lt.s32.totalorder %s338_s26, %s338_s26 }
  0x18   : > { %p1555_p4 = pneg %p2050_p3  ;;  %p1670_p8 = scmp.ne.s32.totalorder %s338_s26, %s1669_s30 }
  0x19   : > { %p1678_p12 = scmp.lt.s32.totalorder %s1669_s30, %s1669_s30 }
  0x1a   : > { %p2059_p6 = pnand %p1555_p4, %p2375_p1 }
  0x1b   : > { %p1679_p13 = por %p1678_p12, %p1677_p11 }
  0x1c   : > { %p2376_p7 = pneg %p2059_p6 }
  0x1e   : > { %p1672_p9 = pnand %p1670_p8, %p2376_p7 }
  0x20   : > { %p1673_p10 = pneg %p1672_p9 }
  0x22   : > { %p1680_p0 = pnand %p1679_p13, %p1673_p10 }
  0x24   : > { %1683 = shalt.err (!%p1680_p0)
}
  0x25   : > { %s2363_s12 = smov 128   ;;  %s2365_s13 = smov 8  }
  0x26   : > { %s2392_s3 = sld [smem:[#allocation28_spill]]  ;;  %s1695_s16 = scalar_lea.vmem %s370_s29, 512 }
  0x27   : > { %p1696_p2 = scmp.ne.s32.totalorder %s370_s29, %s1695_s16  ;;  %p1703_p9 = scmp.lt.s32.totalorder %s370_s29, %s370_s29 }
  0x28   : > { %p1704_p10 = scmp.lt.s32.totalorder %s1695_s16, %s1695_s16 }
  0x29   : > { %p1698_p4 = pnand %p1696_p2, %p2376_p7 }
  0x2a   : > { %p1705_p11 = por %p1704_p10, %p1703_p9 }
  0x2b   : > { %p1699_p8 = pneg %p1698_p4 }
  0x2c   : > { %1558 = dma.hbm_to_vmem [thread:$0]  (!%p2059_p6), %s2392_s3, 512, %s338_s26, [#allocation9], %s2363_s12, %s2363_s12, %s2365_s13  }
  0x2d   : > { %p1706_p12 = pnand %p1705_p11, %p1699_p8 }
  0x2f   : > { %1709 = shalt.err (!%p1706_p12)
}
  0x30   : > { %s2393_s7 = sld [smem:[#allocation30_spill]]  ;;  %s1399_s26 = sadd.s32 4294967294, %s1938_s22  }
  0x31   : > { %s44_s30 = sadd.s32 1, %s1934_s21  ;;  %s53_s14 = sadd.s32 1, %s1926_s19 }
  0x32   : > { %p46_p13 = scmp.ge.s32.totalorder %s44_s30, 2  ;;  %p60_p0 = scmp.ne.s32.totalorder %s1926_s19, %s1922_s18 }
  0x33   : > { %p61_p2 = scmp.eq.s32.totalorder %s1938_s22, 0  ;;  %p66_p8 = scmp.ne.s32.totalorder %s1922_s18, %s1918_s17 }
  0x34   : > { %s2432_s30 = smov (%p46_p13, %s44_s30), 0  ;;  %p312_p9 = scmp.eq.s32.totalorder %s2045_s23, 1 }
  0x35   : > { %2394 = sst [smem:[#allocation23_spill]] %s2432_s30  ;;  %p2095_p4 = por %p61_p2, %p60_p0 }
  0x36   : > { %1564 = dma.hbm_to_vmem [thread:$0]  (!%p2059_p6), %s2393_s7, 512, %s370_s29, [#allocation12], %s2363_s12, %s2363_s12, %s2365_s13  }
  0x37   : > { %s48_s29 = ssub.s32 %s1934_s21, %s2432_s30  ;;  %p2106_p11 = por %p2375_p1, %p66_p8 }
  0x38   : > { %p51_p10 = scmp.eq.s32.totalorder %s48_s29, 0  ;;  %p2110_p12 = por %p312_p9, %p60_p0 }
  0x39   : > { %p318_p13 = scmp.eq.s32.totalorder %s1399_s26, 1  ;;  %p1586_p5 = scmp.lt.s32.totalorder %s1938_s22, 2 }
  0x3a   : > { %s2397_s25 = scalar_select %p2110_p12, 1, 0 }
  0x3b   : > { %s2115_s28 = scalar_select %p51_p10, %s1926_s19, %s53_s14  }
  0x3c   : > { %2398 = sst [smem:[#allocation24_spill]] %s2397_s25  ;;  %p2117_p2 = por %p318_p13, %p66_p8 }
  0x3d   : > { %2399 = sst [smem:[#allocation25_spill]] %s2115_s28  ;;  %s2371_s13 = sand.u32 1, %s1926_s19  }
  0x3e   : > { %s2400_s12 = scalar_select %p2117_p2, 1, 0 }
  0x3f   : > { %s2124_s3 = sshll.u32 %s1934_s21, 7  ;;  %s2128_s29 = sshll.u32 %s2371_s13, 3 }
  0x40   : > { %2401 = sst [smem:[#allocation26_spill]] %s2400_s12  ;;  %p2132_p0 = pnand %p1586_p5, %p2095_p4 }
  0x41   : > { %s421_s26 = sand.u32 1, %s1938_s22   ;;  %s2403_s1 = sld [smem:[#allocation27_spill]] }
  0x42   : > { %s425_s12 = scalar_lea.vmem [#allocation5], %s2128_s29  ;;  %s2142_s17 = scalar_lea.sflag [#allocation6], %s421_s26 }
  0x43   : > { %s432_s21 = sshll.u32 %s425_s12, 4  ;;  %p2377_p8 = pneg %p2132_p0  ;;  %s433_s21 = int_to_ptr.vmem [resolvable:$true] %s432_s21 }
  0x44   : > { %s1723_s15 = scalar_lea.vmem %s433_s21, 128  ;;  %s1944_s13 = smov [#allocation5]  }
  0x45   : > { %p1724_p9 = scmp.ne.s32.totalorder %s433_s21, %s1723_s15  ;;  %s1728_s11 = sshll.u32 %s1944_s13, 4  ;;  %s1729_s11 = int_to_ptr.vmem [resolvable:$false] %s1728_s11 }
  0x46   : > { %s1730_s22 = scalar_lea.vmem %s1729_s11, 256  ;;  %p1731_p10 = scmp.lt.s32.totalorder %s433_s21, %s1729_s11 }
  0x47   : > { %s430_s28 = scalar_lea.hbm %s2403_s1, %s2124_s3  ;;  %p1726_p5 = pnand %p1724_p9, %p2377_p8 }
  0x48   : > { %p1732_p13 = scmp.lt.s32.totalorder %s1730_s22, %s1723_s15 }
  0x49   : > { %p1727_p4 = pneg %p1726_p5 }
  0x4a   : > { %p1733_p1 = por %p1732_p13, %p1731_p10 }
  0x4c   : > { %p1734_p7 = pnand %p1733_p1, %p1727_p4 }
  0x4e   : > { %1737 = shalt.err (!%p1734_p7)
}
  0x4f   : > { %1574 = dma.hbm_to_vmem [thread:$0]  (!%p2132_p0), %s430_s28, 128, %s433_s21, %s2142_s17  }
  0x50   : > { %s1945_s12 = smov [#allocation10]   ;;  %s1946_s26 = smov [#allocation13]  }
  0x51   : > { %s353_s30 = sshll.u32 %s1945_s12, 4  ;;  %s385_s14 = sshll.u32 %s1946_s26, 4  ;;  %s354_s30 = int_to_ptr.vmem [resolvable:$true] %s353_s30  ;;  %s386_s14 = int_to_ptr.vmem [resolvable:$true] %s385_s14 }
  0x52   : > { %s1749_s1 = scalar_lea.vmem %s354_s30, 512  ;;  %p2404_p5 = pneg %p2059_p6 }
  0x53   : > { %p1750_p9 = scmp.ne.s32.totalorder %s354_s30, %s1749_s1  ;;  %p1757_p12 = scmp.lt.s32.totalorder %s354_s30, %s354_s30 }
  0x54   : > { %p1758_p10 = scmp.lt.s32.totalorder %s1749_s1, %s1749_s1 }
  0x55   : > { %p1752_p8 = pnand %p1750_p9, %p2404_p5 }
  0x56   : > { %p1759_p1 = por %p1758_p10, %p1757_p12 }
  0x57   : > { %p1753_p2 = pneg %p1752_p8 }
  0x59   : > { %p1760_p7 = pnand %p1759_p1, %p1753_p2 }
  0x5b   : > { %1763 = shalt.err (!%p1760_p7)
}
  0x5c   : > { %s2405_s11 = smov 8   ;;  %s2406_s21 = smov 128  }
  0x5d   : > { %s2407_s5 = sld [smem:[#allocation29_spill]]  ;;  %s1775_s28 = scalar_lea.vmem %s386_s14, 512 }
  0x5e   : > { %p1776_p4 = scmp.ne.s32.totalorder %s386_s14, %s1775_s28  ;;  %p2408_p8 = pmov %p2404_p5 }
  0x5f   : > { %p1783_p12 = scmp.lt.s32.totalorder %s386_s14, %s386_s14  ;;  %p1784_p2 = scmp.lt.s32.totalorder %s1775_s28, %s1775_s28 }
  0x60   : > { %p1778_p13 = pnand %p1776_p4, %p2408_p8 }
  0x61   : > { %p1785_p5 = por %p1784_p2, %p1783_p12 }
  0x62   : > { %p1779_p9 = pneg %p1778_p13 }
  0x63   : > { %1561 = dma.hbm_to_vmem [thread:$0]  (!%p2059_p6), %s2407_s5, 512, %s354_s30, [#allocation9], %s2406_s21, %s2406_s21, %s2405_s11  }
  0x64   : > { %p1786_p10 = pnand %p1785_p5, %p1779_p9 }
  0x66   : > { %1789 = shalt.err (!%p1786_p10)
}
  0x67   : > { %1567 = dma.hbm_to_vmem [thread:$0]  (!%p2059_p6), %s2360_s9, 512, %s386_s14, [#allocation12], %s2406_s21, %s2406_s21, %s2405_s11  }
  0x68   : > { %s412_s26 = scalar_lea.hbm %s2351_s0, %s2124_s3  ;;  %s406_s22 = scalar_lea.vmem [#allocation2], %s2128_s29 }
  0x69   : > { %s414_s13 = sshll.u32 %s406_s22, 4  ;;  %s448_s5 = scalar_lea.hbm %s2353_s2, %s2124_s3  ;;  %s415_s13 = int_to_ptr.vmem [resolvable:$true] %s414_s13 }
  0x6a   : > { %s2409_s10 = sand.u32 1, %s1926_s19   ;;  %s1803_s1 = scalar_lea.vmem %s415_s13, 128 }
  0x6b   : > { %s403_s25 = scalar_lea.sflag [#allocation3], %s2409_s10  ;;  %p1804_p1 = scmp.ne.s32.totalorder %s415_s13, %s1803_s1 }
  0x6c   : > { %p2410_p7 = pneg %p2132_p0  ;;  %s1947_s14 = smov [#allocation2]  }
  0x6d   : > { %s1808_s11 = sshll.u32 %s1947_s14, 4  ;;  %s1809_s11 = int_to_ptr.vmem [resolvable:$false] %s1808_s11 }
  0x6e   : > { %p1806_p4 = pnand %p1804_p1, %p2410_p7  ;;  %s1810_s21 = scalar_lea.vmem %s1809_s11, 256 }
  0x6f   : > { %p1811_p6 = scmp.lt.s32.totalorder %s415_s13, %s1809_s11  ;;  %p1812_p13 = scmp.lt.s32.totalorder %s1810_s21, %s1803_s1 }
  0x70   : > { %p1807_p8 = pneg %p1806_p4 }
  0x71   : > { %p1813_p9 = por %p1812_p13, %p1811_p6 }
  0x73   : > { %p1814_p12 = pnand %p1813_p9, %p1807_p8 }
  0x75   : > { %1817 = shalt.err (!%p1814_p12)
}
  0x76   : > { %1571 = dma.hbm_to_vmem [thread:$0]  (!%p2132_p0), %s412_s26, 128, %s415_s13, %s403_s25  }
  0x77   : > { %s443_s10 = scalar_lea.vmem [#allocation7], %s2128_s29  ;;  %p2411_p5 = pmov %p2410_p7 }
  0x78   : > { %s450_s15 = sshll.u32 %s443_s10, 4  ;;  %s1948_s30 = smov [#allocation7]   ;;  %s451_s15 = int_to_ptr.vmem [resolvable:$true] %s450_s15 }
  0x79   : > { %s1831_s12 = scalar_lea.vmem %s451_s15, 128  ;;  %s1836_s22 = sshll.u32 %s1948_s30, 4  ;;  %s1837_s22 = int_to_ptr.vmem [resolvable:$false] %s1836_s22 }
  0x7a   : > { %p1832_p2 = scmp.ne.s32.totalorder %s451_s15, %s1831_s12  ;;  %s1838_s27 = scalar_lea.vmem %s1837_s22, 256 }
  0x7b   : > { %p1839_p7 = scmp.lt.s32.totalorder %s451_s15, %s1837_s22  ;;  %p1840_p4 = scmp.lt.s32.totalorder %s1838_s27, %s1831_s12 }
  0x7c   : > { %p1834_p10 = pnand %p1832_p2, %p2411_p5 }
  0x7d   : > { %p1841_p8 = por %p1840_p4, %p1839_p7 }
  0x7e   : > { %p1835_p1 = pneg %p1834_p10 }
  0x80   : > { %p1842_p6 = pnand %p1841_p8, %p1835_p1 }
  0x82   : > { %1845 = shalt.err (!%p1842_p6)
}
  0x83   : > { %1577 = dma.hbm_to_vmem [thread:$0]  (!%p2132_p0), %s448_s5, 128, %s451_s15, %s2142_s17  }
  0x84   : > { %459 = sbr.rel (%p2050_p3) target bundleno = 1887 (0x75f), region = 64  ;;  %s2205_s26 = sand.u32 (!%p2050_p3), 1, %s1922_s18  }
  0x85   : > { %s2208_s13 = sshll.u32 (!%p2050_p3), %s2205_s26, 3  ;;  %s462_s7 = scalar_lea.sflag (!%p2050_p3), [#allocation3], %s2205_s26 }
  0x86   : > { %s465_s28 = scalar_lea.vmem (!%p2050_p3), [#allocation2], %s2208_s13 }
  0x89   : > { %1897 = dma.done.wait (%p2106_p11), %s462_s7, 128  }
  0x8a   : > { %1899 = vsyncadd (%p2106_p11), %s462_s7, 4294967168  ;;  %s470_s3 = sand.u32 1, %s2045_s23   ;;  %s474_s17 = scalar_lea.vmem [#allocation5], %s2208_s13 }
  0x8b   : > { %s471_s5 = scalar_lea.sflag [#allocation6], %s470_s3 }
  0x8c   : > { %1901 = dma.done.wait (%p2106_p11), %s471_s5, 256  }
  0x8d   : > { %1903 = vsyncadd (%p2106_p11), %s471_s5, 4294967040  ;;  %s483_s24 = scalar_lea.vmem [#allocation7], %s2208_s13  ;;  %p2412_p3 = scmp.eq.s32.totalorder %s2045_s23, 0 }
  0x8f   : > { %1905 = dma.done.wait (%p2412_p3), [#allocation9], 1024   ;;  %p2413_p0 = pmov %p2412_p3 }
  0x91   : > { %1907 = vsyncadd (%p2413_p0), [#allocation9], 4294966272  ;;  %p2414_p13 = pmov %p2413_p0 }
  0x92   : > { %p2415_p9 = pmov %p2413_p0 }
  0x93   : > { %1909 = dma.done.wait (%p2414_p13), [#allocation12], 1024  }
  0x94   : > { %1911 = vsyncadd (%p2415_p9), [#allocation12], 4294966272  ;;  %v1949_v0 = vmov 0.0   ;;  %vm1950_vm0 = vmmov 0   ;;  %v639_v1 = vld [vmem:[#allocation10 + $0x18] sm:$0xff]  ;;  %v638_v3 = vld [vmem:[#allocation10 + $0x10] sm:$0xff] }
  0x95   : > { %1478 = vmatprep.subr.mxu1 %v1949_v0  ;;  %1467 = vmatprep.subr.mxu0 %v1949_v0  ;;  %v554_v2 = vld [vmem:[#allocation8 + $0x18] sm:$0xff]  ;;  %v553_v4 = vld [vmem:[#allocation8 + $0x10] sm:$0xff]  ;;  %v637_v5 = vld [vmem:[#allocation10 + $0x8] sm:$0xff]  ;;  %vm562_vm1 = vcmask 261120   ;;  %vm804_vm2 = vcmask 130048   ;;  %s1951_s11 = smov 112  }
  0x96   : > { %1486 = vmatprep.mubr.msk.f32.mxu1 %vm1950_vm0, %v1949_v0  ;;  %1475 = vmatprep.mubr.msk.f32.mxu0 %vm1950_vm0, %v1949_v0  ;;  %v552_v6 = vld [vmem:[#allocation8 + $0x8] sm:$0xff]  ;;  %v636_v7 = vld [vmem:[#allocation10] sm:$0xff]  ;;  %v548_v10 = vld [vmem:[%s465_s28] sm:$0xff]  ;;  %vm881_vm3 = vcmask 64512   ;;  %s1952_s15 = smov 16   ;;  %s2416_s12 = sld [smem:[#allocation24_spill]] }
  0x97   : > { %1479 = vmatpush3.msra.mxu1 %v639_v1  ;;  %1468 = vmatpush3.msra.mxu0 %v554_v2  ;;  %v551_v8 = vld [vmem:[#allocation8] sm:$0xff]  ;;  %v1423_v11 = vld [vmem:[%s2357_s6] ss:$0 sm:$0xff]  ;;  %v723_v19 = vld [vmem:[#allocation11 + $0x18] sm:$0xff]  ;;  %s2417_s27 = sld [smem:[#allocation31_spill]]  ;;  %s1436_s25 = sshll.u32 %s1930_s20, 7 }
  0x98   : > { %1480 = vmatprep.subr.mxu1 %v1949_v0  ;;  %1469 = vmatprep.subr.mxu0 %v1949_v0  ;;  %v549_v9 = vld [vmem:[%s474_s17] sm:$0xff]  ;;  %v1421_v12 = vld [vmem:[%s2355_s4] ss:$0 sm:$0xff]  ;;  %v1140_v55 = vld [vmem:[#allocation13 + $0x18] sm:$0xff]  ;;  %s547_s29 = scalar_lea.vmem [#allocation14], %s2208_s13  ;;  %s2418_s5 = sld [smem:[#allocation32_spill]] }
  0x99   : > { %1481 = vmatpush3.msra.mxu1 %v638_v3  ;;  %1470 = vmatpush3.msra.mxu0 %v553_v4  ;;  %v722_v20 = vld [vmem:[#allocation11 + $0x10] sm:$0xff]  ;;  %v721_v21 = vld [vmem:[#allocation11 + $0x8] sm:$0xff]  ;;  %v720_v22 = vld [vmem:[#allocation11] sm:$0xff]  ;;  %s1237_s7 = sshll.u32 %s547_s29, 4  ;;  %s1953_s20 = smov [#allocation14]   ;;  %s1238_s7 = int_to_ptr.vmem [resolvable:$true] %s1237_s7 }
  0x9a   : > { %1482 = vmatprep.subr.mxu1 %v1949_v0  ;;  %1471 = vmatprep.subr.mxu0 %v1949_v0  ;;  %v550_v23 = vld [vmem:[%s483_s24] sm:$0xff]  ;;  %v1138_v57 = vld [vmem:[#allocation13 + $0x8] sm:$0xff]  ;;  %v1137_v58 = vld [vmem:[#allocation13] sm:$0xff]  ;;  %s1223_s24 = scalar_lea.sflag [#allocation4], %s2205_s26  ;;  %s1846_s23 = scalar_lea.vmem %s1238_s7, 128 }
  0x9b   : > { %1483 = vmatpush3.msra.mxu1 %v637_v5  ;;  %1472 = vmatpush3.msra.mxu0 %v552_v6  ;;  %v1425_v32 = vld [vmem:[%s2359_s8] ss:$0 sm:$0xff]  ;;  %p1847_p11 = scmp.ne.s32.totalorder %s1238_s7, %s1846_s23  ;;  %s1850_s13 = sshll.u32 %s1953_s20, 4  ;;  %s1851_s13 = int_to_ptr.vmem [resolvable:$false] %s1850_s13 }
  0x9c   : > { %1484 = vmatprep.subr.mxu1 %v1949_v0  ;;  %1473 = vmatprep.subr.mxu0 %v1949_v0  ;;  %v1139_v56 = vld [vmem:[#allocation13 + $0x10] sm:$0xff]  ;;  %p2419_p12 = scmp.ne.s32.totalorder %s2416_s12, 0  ;;  %s1852_s16 = scalar_lea.vmem %s1851_s13, 256 }
  0x9d   : > { %1485 = vmatpush3.msra.mxu1 %v636_v7  ;;  %1474 = vmatpush3.msra.mxu0 %v551_v8  ;;  %v1433_v63 = vld [vmem:[%s2417_s27] ss:$0 sm:$0xff]  ;;  %p1853_p10 = scmp.lt.s32.totalorder %s1238_s7, %s1851_s13  ;;  %p1854_p1 = scmp.lt.s32.totalorder %s1852_s16, %s1846_s23 }
  0x9e   : > { %1487 = vmatmul.mubr.msk.f32.vlgmr.msra.gmra.mxu1 %vm562_vm1, %v549_v9  ;;  %1476 = vmatmul.mubr.msk.f32.vlgmr.msra.gmra.mxu0 %vm562_vm1, %v548_v10  ;;  %s2308_s17 = scalar_lea.hbm %s2418_s5, %s1436_s25  ;;  %p1848_p2 = pnand %p1847_p11, %p2419_p12 }
  0x9f   : > { %1500 = vmatprep.subr.mxu1 %v1949_v0  ;;  %1502 = vmatprep.mubr.msk.f32.mxu1 %vm1950_vm0, %v1949_v0  ;;  %p1855_p7 = por %p1854_p1, %p1853_p10 }
  0xa0   : > { %1489 = vmatprep.subr.mxu0 %v1949_v0  ;;  %1497 = vmatprep.mubr.msk.f32.mxu0 %vm1950_vm0, %v1949_v0  ;;  %p1849_p5 = pneg %p1848_p2 }
  0xa1   : > { %1490 = vmatpush3.msra.mxu0 %v723_v19 }
  0xa2   : > { %1491 = vmatprep.subr.mxu0 %v1949_v0  ;;  %p1856_p4 = pnand %p1855_p7, %p1849_p5 }
  0xa3   : > { %1492 = vmatpush3.msra.mxu0 %v722_v20 }
  0xa4   : > { %1493 = vmatprep.subr.mxu0 %v1949_v0 }
  0xa5   : > { %1494 = vmatpush3.msra.mxu0 %v721_v21 }
  0xa6   : > { %1495 = vmatprep.subr.mxu0 %v1949_v0 }
  0xa7   : > { %1496 = vmatpush3.msra.mxu0 %v720_v22 }
  0xa8   : > { %1498 = vmatmul.mubr.msk.f32.vlgmr.msra.gmra.mxu0 %vm562_vm1, %v550_v23  ;;  %1520 = vmatprep.subr.mxu0 %v1949_v0 }
  0xa9   : > { %1528 = vmatprep.mubr.msk.f32.mxu0 %vm1950_vm0, %v1949_v0  ;;  %1521 = vmatpush3.msra.mxu0 %v1140_v55 }
  0xaa   : > { %1522 = vmatprep.subr.mxu0 %v1949_v0 }
  0xab   : > { %1523 = vmatpush3.msra.mxu0 %v1139_v56 }
  0xac   : > { %1524 = vmatprep.subr.mxu0 %v1949_v0 }
  0xad   : > { %1525 = vmatpush3.msra.mxu0 %v1138_v57 }
  0xae   : > { %1526 = vmatprep.subr.mxu0 %v1949_v0 }
  0xaf   : > { %1527 = vmatpush3.msra.mxu0 %v1137_v58 }
 0x15e   : > { %v716_v13 = vpop.f32.mrf.mxu1  ;;  %v632_v14 = vpop.f32.mrf.mxu0 }
 0x15f   : > { %v717_v15 = vadd.f32 %v1423_v11, %v716_v13  ;;  %v633_v16 = vadd.f32 %v1421_v12, %v632_v14 }
 0x160   : > { %v1488_v17 = vpop.f32.mrf.mxu1  ;;  %v1477_v18 = vpop.f32.mrf.mxu0 }
 0x161   : > { %968 = vrot.lane.b32.xlu1 %v717_v15, %s1951_s11  ;;  %1501 = vmatpush3.xpose.msk.msra.mxu1 %vm804_vm2, %v717_v15 }
 0x162   : > { %1505 = vmatprep.subr.mxu1 %v1949_v0 }
 0x164   : > { %1503 = vmatmul.mubr.msk.f32.vlgmr.msra.gmra.mxu1 %vm804_vm2, %v633_v16 }
 0x165   : > { %966 = vrot.lane.b32.xlu1 %v633_v16, %s1951_s11  ;;  %1507 = vmatprep.mubr.msk.f32.mxu1 %vm1950_vm0, %v1949_v0 }
 0x168   : > { %v800_v33 = vpop.f32.mrf.mxu0 }
 0x169   : > { %v801_v34 = vadd.f32 %v1425_v32, %v800_v33 }
 0x16a   : > { %v1499_v35 = vpop.f32.mrf.mxu0 }
 0x16b   : > { %1506 = vmatpush3.msra.mxu1 %v801_v34 }
 0x16c   : > { %1510 = vmatprep.subr.mxu1 %v1949_v0 }
 0x1d3   : > { %v969_v38 = vpop.permute.xlu1 %968 }
 0x1d7   : > { %v967_v40 = vpop.permute.xlu1 %966 }
 0x224   : > { %v877_v24 = vpop.f32.mrf.mxu1 }
 0x225   : > { %v882_v25 = vsel %vm881_vm3, %v877_v24, -inf }
 0x226   : > { %883 = vmax.xlane.f32.xlu0 %v882_v25  ;;  %v1504_v26 = vpop.f32.mrf.mxu1 }
 0x2af   : > { %v884_v27 = vpop.xlane.xlu0 %883 }
 0x2b0   : > { %v885_v28 = vsub.f32 %v877_v24, %v884_v27 }
 0x2b2   : > { %v886_v29 = vmul.f32 1.442695, %v885_v28 }
 0x2b4   : > { %1650 = vpow2.f32 %v886_v29 }
 0x2c1   : > { %v1651_v30 = vpop.eup %1650 }
 0x2c2   : > { %v888_v31 = vsel %vm881_vm3, %v1651_v30, 0.0 }
 0x2c3   : > { %889 = vadd.xlane.f32.xlu0 %v888_v31 }
 0x34c   : > { %v890_v36 = vpop.xlane.xlu0 %889 }
 0x34d   : > { %1652 = vrcp.f32 %v890_v36 }
 0x35a   : > { %v1653_v37 = vpop.eup %1652 }
 0x35b   : > { %v892_v39 = vmul.f32 %v1653_v37, %v1651_v30 }
 0x35d   : > { %1508 = vmatmul.mubr.msk.f32.vlgmr.msra.gmra.mxu1 %vm881_vm3, %v892_v39 }
 0x35e   : > { %1511 = vmatpush3.xpose.msk.msra.mxu1 %vm804_vm2, %v969_v38  ;;  %1512 = vmatprep.mubr.msk.f32.mxu1 %vm1950_vm0, %v1949_v0 }
 0x35f   : > { %1515 = vmatprep.subr.mxu1 %v1949_v0 }
 0x361   : > { %1513 = vmatmul.mubr.msk.f32.vlgmr.msra.gmra.mxu1 %vm804_vm2, %v967_v40 }
 0x362   : > { %1517 = vmatprep.mubr.msk.f32.mxu1 %vm1950_vm0, %v1949_v0 }
 0x41d   : > { %v962_v41 = vpop.f32.mrf.mxu1 }
 0x41f   : > { %v1509_v42 = vpop.f32.mrf.mxu1 }
 0x421   : > { %v1040_v43 = vpop.f32.mrf.mxu1 }
 0x422   : > { %v1044_v44 = vsel %vm881_vm3, %v1040_v43, -inf }
 0x423   : > { %1045 = vmax.xlane.f32.xlu0 %v1044_v44  ;;  %v1514_v45 = vpop.f32.mrf.mxu1 }
 0x439   : > { %1056 = vrot.lane.b32.xlu0 %v801_v34, %s1951_s11 }
 0x4ac   : > { %v1046_v46 = vpop.xlane.xlu0 %1045 }
 0x4ad   : > { %v1047_v47 = vsub.f32 %v1040_v43, %v1046_v46 }
 0x4af   : > { %v1048_v48 = vmul.f32 1.442695, %v1047_v47 }
 0x4b0   : > { %v1057_v49 = vpop.permute.xlu0 %1056 }
 0x4b1   : > { %1654 = vpow2.f32 %v1048_v48  ;;  %1516 = vmatpush3.msra.mxu1 %v1057_v49 }
 0x4be   : > { %v1655_v50 = vpop.eup %1654 }
 0x4bf   : > { %v1050_v51 = vsel %vm881_vm3, %v1655_v50, 0.0 }
 0x4c0   : > { %1051 = vadd.xlane.f32.xlu1 %v1050_v51 }
 0x549   : > { %v1052_v52 = vpop.xlane.xlu1 %1051 }
 0x54a   : > { %1656 = vrcp.f32 %v1052_v52 }
 0x557   : > { %v1657_v53 = vpop.eup %1656 }
 0x558   : > { %v1054_v54 = vmul.f32 %v1657_v53, %v1655_v50 }
 0x55a   : > { %1518 = vmatmul.mubr.msk.f32.vlgmr.msra.gmra.mxu1 %vm881_vm3, %v1054_v54 }
 0x61a   : > { %v1128_v59 = vpop.f32.mrf.mxu1 }
 0x61b   : > { %1133 = vrot.lane.b32.xlu0 %v1128_v59, %s1952_s15 }
 0x61c   : > { %v1519_v60 = vpop.f32.mrf.mxu1 }
 0x68d   : > { %v1134_v61 = vpop.permute.xlu0 %1133 }
 0x68e   : > { %v1136_v62 = vsel %vm804_vm2, %v962_v41, %v1134_v61 }
 0x68f   : > { %1529 = vmatmul.mubr.msk.f32.vlgmr.msra.gmra.mxu0 %vm562_vm1, %v1136_v62 }
 0x74f   : > { %v1217_v0 = vpop.f32.mrf.mxu0 }
 0x750   : > { %v1218_v1 = vadd.f32 %v1433_v63, %v1217_v0 }
 0x751   : > { %v1530_v2 = vpop.f32.mrf.mxu0 }
 0x752   : > { %1221 = vst.msk [vmem:[%s547_s29] sm:$0xff] %vm562_vm1, %v1218_v1 }
 0x753   : > { %1859 = shalt.err (!%p1856_p4)
}
 0x754   : > { %s1860_s1 = scalar_lea.hbm %s2308_s17, 128  ;;  %s1864_s11 = scalar_lea.hbm %s2418_s5, 256 }
 0x755   : > { %p1861_p8 = scmp.ne.s32.totalorder %s2308_s17, %s1860_s1  ;;  %p1865_p0 = scmp.lt.s32.totalorder %s2308_s17, %s2418_s5 }
 0x756   : > { %p1866_p13 = scmp.lt.s32.totalorder %s1864_s11, %s1860_s1 }
 0x757   : > { %p1862_p6 = pnand %p1861_p8, %p2419_p12 }
 0x758   : > { %p1867_p9 = por %p1866_p13, %p1865_p0 }
 0x759   : > { %p1863_p3 = pneg %p1862_p6 }
 0x75b   : > { %p1868_p11 = pnand %p1867_p9, %p1863_p3 }
 0x75d   : > { %1871 = shalt.err (!%p1868_p11)
}
 0x75e   : > { %1553 = dma.vmem_to_hbm [thread:$0]  (%p2419_p12), %s1238_s7, 128, %s2308_s17, %s1223_s24  }
 0x75f PF: > { %s2420_s15 = sld [smem:[#allocation20_spill]] }
 0x760   : > { %s2421_s30 = sld [smem:[#allocation26_spill]] }
 0x761   : > { %s2422_s22 = sld [smem:[#allocation22_spill]] }
 0x765   : > { %s1249_s27 = sand.u32 1, %s2420_s15  }
 0x766   : > { %p2423_p2 = scmp.ne.s32.totalorder %s2421_s30, 0  ;;  %s1250_s25 = scalar_lea.sflag [#allocation4], %s1249_s27 }
 0x767   : > { %p2424_p5 = scmp.ge.s32.totalorder %s2422_s22, 2 }
 0x769   : > { %p1579_p10 = pnand %p2424_p5, %p2423_p2 }
 0x76b   : > { %p1580_p1 = pneg %p1579_p10 }
 0x76d   : > { %1913 = dma.done.wait (%p1580_p1), %s1250_s25, 128  }
 0x76e   : > { %1915 = vsyncadd (%p1580_p1), %s1250_s25, 4294967168  ;;  %s32_s22 = sadd.s32 1, %s2422_s22   ;;  %s2425_s12 = sld [smem:[#allocation25_spill]] }
 0x76f   : > { %p29_p7 = scmp.ge.s32.totalorder %s32_s22, 4   ;;  %s2426_s20 = sld [smem:[#allocation21_spill]] }
 0x770   : > { %s2427_s21 = sld [smem:[#allocation23_spill]]  ;;  %s2428_s17 = smov %s1922_s18 }
 0x771   : > { %s2429_s18 = smov %s1926_s19  ;;  %31 = sbr.rel (!%p29_p7) target bundleno = 17 (0x11), region = 149 }
 0x774   : > { %s2430_s19 = smov %s2425_s12 }
 0x776   :  { %1255 = vsyncpa [#allocation3], 1 }
 0x777   :  { %1257 = vsyncpa [#allocation3 + $0x1], 1 }
 0x778   :  { %1258 = vsyncpa [#allocation6], 1 }
 0x779   :  { %1260 = vsyncpa [#allocation6 + $0x1], 1 }
 0x77a   :  { %1261 = vsyncpa [#allocation9], 1 }
 0x77b   :  { %1262 = vsyncpa [#allocation12], 1 }
 0x77c   :  { %1263 = vsyncpa [#allocation4], 1 }
 0x77d   :  { %1265 = vsyncpa [#allocation4 + $0x1], 1 }

</bundles_post_ra>
